<compile_context>
chip_gen: v6e
topology: v6e:2x2x1
jax: 0.10.0
libtpu: 0.0.40
codegen_flags: <defaults>
</compile_context>

<pallas_src>
import functools

import jax
import jax.numpy as jnp
from jax.experimental import pallas as pl
from jax.experimental.pallas import tpu as pltpu


def _sum_reduce_kernel(*refs):
    # refs = (in_ref_0, ..., in_ref_{W-1}, out_ref)
    *in_refs, out_ref = refs
    acc = in_refs[0][...].astype(jnp.float32)
    for r in in_refs[1:]:
        acc = acc + r[...].astype(jnp.float32)   # sequential: O(1) live tiles
    out_ref[...] = acc.astype(out_ref.dtype)


def _cdiv(a: int, b: int) -> int:
    return -(-a // b)


_MAX_LANE_WIDTH = 8192  # widest C considered (64 * 128)


def _chip_params():
    """Generation-specific tiling policy, inferred from VMEM capacity."""
    try:
        cap = int(pltpu.get_tpu_info().vmem_capacity_bytes)
    except Exception:
        cap = 64 << 20  # conservative (v7x-sized) fallback
    if cap <= (64 << 20):
        # v7x-class: 64 MiB VMEM/TC, ~3.2 TB/s HBM -> larger per-step byte
        # floor, tight VMEM headroom (limit <= 48 MiB).
        return {
            "budget": 32 << 20,       # working-set budget for tiles
            "limit_cap": 48 << 20,    # hard cap on vmem_limit_bytes
            "step_floor": 4 << 20,    # min HBM bytes moved per grid step
            "step_target": 16 << 20,  # target HBM bytes moved per grid step
        }
    # v5e/v6e-class: 128 MiB VMEM, ~0.8-1.4 TB/s HBM.  Roofline knee is at
    # ~1-2 MiB per step; do NOT over-reserve scoped VMEM.
    return {
        "budget": 32 << 20,
        "limit_cap": 64 << 20,
        "step_floor": 2 << 20,
        "step_target": 12 << 20,
    }


def _choose_layout(B: int, D: int):
    """Pick a lane-dense [R, C] view of the flat [B*D] data (free reshape for
    contiguous row-major inputs).  C is the widest multiple-of-128 divisor of
    N that still leaves enough rows (prefer R >= 64, then R >= 8, then any).
    If N is not a multiple of 128, fall back to the original [B, D] layout
    (full-D blocks are still legal, only the store path is masked)."""
    N = B * D
    if N % 128 != 0:
        return B, D
    for want_rows in (64, 8, 1):
        for m in range(_MAX_LANE_WIDTH // 128, 0, -1):
            c = 128 * m
            if N % c == 0 and N // c >= want_rows:
                return N // c, c
    return N // 128, 128  # unreachable (c=128 always divides), kept for safety


def _pick_tile_rows(R: int, C: int, world_size: int, itemsize: int, params):
    """Rows per grid step.  Returns (tb, per_row_vmem_bytes)."""
    # HBM bytes moved per row per step (W inputs + 1 output).
    bytes_per_row_step = (world_size + 1) * C * itemsize
    # Double-buffered VMEM tiles per row ...
    per_row_vmem = (world_size + 1) * 2 * C * itemsize
    # ... plus f32 accumulation temporaries for sub-32-bit inputs.
    if itemsize < 4:
        per_row_vmem += 2 * C * 4

    budget = params["budget"]
    tb_budget = max(1, budget // per_row_vmem)                       # hard VMEM cap
    tb_target = max(1, params["step_target"] // bytes_per_row_step)  # roofline knee
    tb_floor = max(1, _cdiv(params["step_floor"], bytes_per_row_step))

    tb = min(tb_budget, tb_target)
    if R >= 64:
        tb = min(tb, R // 8)                     # keep >= 8 grid steps when affordable
    tb = max(tb, min(tb_floor, tb_budget))       # amortize ~0.35 us per-step overhead
    tb = min(tb, R)
    if R >= 8:
        tb = max(8, (tb // 8) * 8)               # sublane-aligned blocks
    tb = min(tb, R)

    # Prefer an even number of steps (v7x megacore balance) when it costs nothing.
    steps = _cdiv(R, tb)
    if steps >= 3 and steps % 2 == 1:
        alt = _cdiv(R, steps + 1)
        if R >= 8:
            alt = max(8, _cdiv(alt, 8) * 8)
        if alt >= 1 and alt * per_row_vmem <= budget and _cdiv(R, alt) % 2 == 0:
            tb = alt

    return int(tb), per_row_vmem


def embeddings_all_to_one_reduce(tensors):
    """Pallas equivalent of EmbeddingsAllToOneReduce.forward.

    Args:
        tensors: list of world_size arrays, all of shape [B, D], same dtype.
    Returns:
        [B, D] array: elementwise sum of all inputs.
    """
    world_size = len(tensors)
    assert world_size >= 1
    shape = tensors[0].shape
    dtype = tensors[0].dtype
    for t in tensors:
        assert t.shape == shape and t.dtype == dtype
    if world_size == 1:
        return tensors[0]

    B, D = shape
    params = _chip_params()
    R, C = _choose_layout(B, D)
    itemsize = jnp.dtype(dtype).itemsize

    # Very large world_size: (W+1) double-buffered streams (+ f32 temps) would
    # not fit the VMEM budget even at 8-row tiles -> two-level tree reduce so
    # every call keeps 8-row-aligned, multi-MiB tiles and stays HBM-bound.
    min_footprint = (world_size + 1) * 2 * 8 * C * itemsize
    if itemsize < 4:
        min_footprint += 2 * 8 * C * 4
    if world_size > 2 and min_footprint > params["budget"]:
        mid = world_size // 2
        left = embeddings_all_to_one_reduce(list(tensors[:mid]))
        right = embeddings_all_to_one_reduce(list(tensors[mid:]))
        return embeddings_all_to_one_reduce([left, right])

    xs = [t.reshape(R, C) for t in tensors]
    tb, per_row_vmem = _pick_tile_rows(R, C, world_size, itemsize, params)
    grid = (pl.cdiv(R, tb),)

    spec = pl.BlockSpec((tb, C), lambda i: (i, 0))

    footprint = tb * per_row_vmem
    vmem_limit = int(min(params["limit_cap"],
                         max(footprint + (8 << 20), 16 << 20)))

    cost = pl.CostEstimate(
        flops=(world_size - 1) * B * D,
        transcendentals=0,
        bytes_accessed=(world_size + 1) * B * D * itemsize,
    )

    out = pl.pallas_call(
        _sum_reduce_kernel,
        out_shape=jax.ShapeDtypeStruct((R, C), dtype),
        grid_spec=pltpu.PrefetchScalarGridSpec(
            num_scalar_prefetch=0,
            grid=grid,
            in_specs=[spec] * world_size,
            out_specs=spec,
        ),
        compiler_params=pltpu.CompilerParams(
            dimension_semantics=("parallel",),
            vmem_limit_bytes=vmem_limit,
        ),
        cost_estimate=cost,
    )(*xs)
    return out.reshape(B, D)


class EmbeddingsAllToOneReduce:
    """Thin wrapper mirroring the torchrec module's interface (single-host)."""

    def __init__(self, device: str, world_size: int) -> None:
        self._device = device
        self._world_size = world_size

    def set_device(self, device_str: str) -> None:
        self._device = device_str

    def __call__(self, tensors):
        assert len(tensors) == self._world_size
        # TODO(synk): true multi-device all-to-one placement (RDMA of remote
        # shards to one device via pltpu.make_async_remote_copy) is a
        # distributed-runtime concern; here we implement the sum-reduce
        # semantics on the local device.
        return embeddings_all_to_one_reduce(tensors)


if __name__ == "__main__":
    key = jax.random.PRNGKey(0)
    world_size = 4
    mod = EmbeddingsAllToOneReduce(device="tpu:0", world_size=world_size)

    # Test 1: f32, N a multiple of 128 (lane-dense [R, C] reshape path).
    B, D = 64, 256
    keys = jax.random.split(key, world_size)
    tensors = [jax.random.normal(k, (B, D), dtype=jnp.float32) for k in keys]
    out = jax.block_until_ready(mod(tensors))
    ref = functools.reduce(jnp.add, tensors)
    assert out.shape == (B, D)
    assert jnp.allclose(out, ref, atol=1e-5, rtol=1e-5)

    # Test 2: N not a multiple of 128 (fallback [B, D] layout, masked stores).
    B2, D2 = 16, 100
    keys2 = jax.random.split(jax.random.PRNGKey(1), world_size)
    tensors2 = [jax.random.normal(k, (B2, D2), dtype=jnp.float32) for k in keys2]
    out2 = jax.block_until_ready(embeddings_all_to_one_reduce(tensors2))
    ref2 = functools.reduce(jnp.add, tensors2)
    assert out2.shape == (B2, D2)
    assert jnp.allclose(out2, ref2, atol=1e-5, rtol=1e-5)

    # Test 3: bf16 inputs (f32 accumulation + f32-temp VMEM accounting path).
    B3, D3 = 32, 128
    keys3 = jax.random.split(jax.random.PRNGKey(2), world_size)
    tensors3 = [jax.random.normal(k, (B3, D3), dtype=jnp.bfloat16) for k in keys3]
    out3 = jax.block_until_ready(embeddings_all_to_one_reduce(tensors3))
    ref3 = functools.reduce(
        jnp.add, [t.astype(jnp.float32) for t in tensors3]).astype(jnp.bfloat16)
    assert out3.shape == (B3, D3)
    assert jnp.allclose(out3.astype(jnp.float32), ref3.astype(jnp.float32),
                        atol=5e-2, rtol=5e-2)

    print("KERNEL_OK")
</pallas_src>

<mosaic_0001>
module attributes {stable_mosaic.version = 11 : i64} {
  func.func @_sum_reduce_kernel(%arg0: i32, %arg1: memref<64x256xf32, #tpu.memory_space<vmem>>, %arg2: memref<64x256xf32, #tpu.memory_space<vmem>>, %arg3: memref<64x256xf32, #tpu.memory_space<vmem>>, %arg4: memref<64x256xf32, #tpu.memory_space<vmem>>, %arg5: memref<64x256xf32, #tpu.memory_space<vmem>>) attributes {dimension_semantics = [#tpu.dimension_semantics<parallel>], iteration_bounds = array<i64: 1>, scalar_prefetch = 0 : i64, scratch_operands = 0 : i64, tpu.core_type = #tpu.core_type<tc>, window_params = [{transform_indices = @transform_0, window_bounds = array<i64: 64, 256>}, {transform_indices = @transform_1, window_bounds = array<i64: 64, 256>}, {transform_indices = @transform_2, window_bounds = array<i64: 64, 256>}, {transform_indices = @transform_3, window_bounds = array<i64: 64, 256>}, {transform_indices = @transform_4, window_bounds = array<i64: 64, 256>}]} {
    %c0 = arith.constant 0 : index
    %c0_0 = arith.constant 0 : index
    %0 = vector.load %arg1[%c0, %c0_0] : memref<64x256xf32, #tpu.memory_space<vmem>>, vector<64x256xf32>
    %c0_1 = arith.constant 0 : index
    %c0_2 = arith.constant 0 : index
    %1 = vector.load %arg2[%c0_1, %c0_2] : memref<64x256xf32, #tpu.memory_space<vmem>>, vector<64x256xf32>
    %2 = arith.addf %0, %1 : vector<64x256xf32>
    %c0_3 = arith.constant 0 : index
    %c0_4 = arith.constant 0 : index
    %3 = vector.load %arg3[%c0_3, %c0_4] : memref<64x256xf32, #tpu.memory_space<vmem>>, vector<64x256xf32>
    %4 = arith.addf %2, %3 : vector<64x256xf32>
    %c0_5 = arith.constant 0 : index
    %c0_6 = arith.constant 0 : index
    %5 = vector.load %arg4[%c0_5, %c0_6] : memref<64x256xf32, #tpu.memory_space<vmem>>, vector<64x256xf32>
    %6 = arith.addf %4, %5 : vector<64x256xf32>
    %c0_7 = arith.constant 0 : index
    %c0_8 = arith.constant 0 : index
    %7 = vector.load %arg5[%c0_7, %c0_8] : memref<64x256xf32, #tpu.memory_space<vmem>>, vector<64x256xf32>
    tpu.vector_store %arg5[%c0_7, %c0_8], %6 {strides = array<i32>} : memref<64x256xf32, #tpu.memory_space<vmem>>, vector<64x256xf32>,
    return
  }
  func.func @transform_0(%arg0: i32) -> (i32, i32) {
    %c0_i32 = arith.constant 0 : i32
    %c0_i32_0 = arith.constant 0 : i32
    return %arg0, %c0_i32 : i32, i32
  }
  func.func @transform_1(%arg0: i32) -> (i32, i32) {
    %c0_i32 = arith.constant 0 : i32
    %c0_i32_0 = arith.constant 0 : i32
    return %arg0, %c0_i32 : i32, i32
  }
  func.func @transform_2(%arg0: i32) -> (i32, i32) {
    %c0_i32 = arith.constant 0 : i32
    %c0_i32_0 = arith.constant 0 : i32
    return %arg0, %c0_i32 : i32, i32
  }
  func.func @transform_3(%arg0: i32) -> (i32, i32) {
    %c0_i32 = arith.constant 0 : i32
    %c0_i32_0 = arith.constant 0 : i32
    return %arg0, %c0_i32 : i32, i32
  }
  func.func @transform_4(%arg0: i32) -> (i32, i32) {
    %c0_i32 = arith.constant 0 : i32
    %c0_i32_0 = arith.constant 0 : i32
    return %arg0, %c0_i32 : i32, i32
  }
}

</mosaic_0001>

<bundles_post_ra>
// kernel: tpu_custom_call.1
= control target key start
LH: loop header
LB: loop body
LE: loop exit
PB: predicated region body
PF: predicated region fallthrough
CT: control target
= control target key end

     0   :  { %9 = vsyncpa [#allocation3], 0  ;;  %s397_s0 = inlined_call_operand.hbm [shape: f32[64,256], index: 0, kind: input, shape index: {}]   ;;  %s398_s1 = inlined_call_operand.hbm [shape: f32[64,256], index: 1, kind: input, shape index: {}]   ;;  %s399_s2 = inlined_call_operand.hbm [shape: f32[64,256], index: 2, kind: input, shape index: {}]   ;;  %s400_s3 = inlined_call_operand.hbm [shape: f32[64,256], index: 3, kind: input, shape index: {}]   ;;  %s401_s4 = inlined_call_operand.hbm [shape: f32[64,256], index: 4, kind: output, shape index: {}]  }
   0x1   :  { %10 = vsyncpa [#allocation6], 0 }
   0x2   :  { %11 = vsyncpa [#allocation9], 0 }
   0x3   :  { %12 = vsyncpa [#allocation4], 0  ;;  %s335_s15 = smov [#allocation5]   ;;  %s336_s17 = smov [#allocation2]  }
   0x4   :  { %s30_s16 = sshll.u32 %s335_s15, 4  ;;  %s18_s18 = sshll.u32 %s336_s17, 4  ;;  %s31_s16 = int_to_ptr.vmem [resolvable:$true] %s30_s16  ;;  %s19_s18 = int_to_ptr.vmem [resolvable:$true] %s18_s18 }
   0x5   :  { %s235_s19 = scalar_lea.vmem %s31_s16, 2048  ;;  %p240_p1 = scmp.lt.s32.totalorder %s31_s16, %s31_s16 }
   0x6   :  { %p236_p0 = scmp.ne.s32.totalorder %s31_s16, %s235_s19  ;;  %p241_p2 = scmp.lt.s32.totalorder %s235_s19, %s235_s19 }
   0x8   :  { %p242_p3 = por %p241_p2, %p240_p1 }
   0xa   :  { %p243_p4 = pnand %p242_p3, %p236_p0 }
   0xc   :  { %246 = shalt.err (!%p243_p4)
}
   0xd   :  { %s337_s20 = smov 256   ;;  %s338_s21 = smov 16  }
   0xe   :  { %36 = dma.hbm_to_vmem [thread:$0]  %s398_s1, 2048, %s31_s16, [#allocation6], %s337_s20, %s337_s20, %s338_s21  }
   0xf   :  { %s255_s24 = scalar_lea.vmem %s19_s18, 2048  ;;  %p260_p6 = scmp.lt.s32.totalorder %s19_s18, %s19_s18 }
  0x10   :  { %p256_p5 = scmp.ne.s32.totalorder %s19_s18, %s255_s24  ;;  %p261_p7 = scmp.lt.s32.totalorder %s255_s24, %s255_s24 }
  0x12   :  { %p262_p8 = por %p261_p7, %p260_p6 }
  0x14   :  { %p263_p9 = pnand %p262_p8, %p256_p5 }
  0x16   :  { %266 = shalt.err (!%p263_p9)
}
  0x17   :  { %24 = dma.hbm_to_vmem [thread:$0]  %s397_s0, 2048, %s19_s18, [#allocation3], %s337_s20, %s337_s20, %s338_s21  }
  0x18   :  { %s339_s27 = smov [#allocation7]   ;;  %s340_s29 = smov [#allocation8]  }
  0x19   :  { %s42_s28 = sshll.u32 %s339_s27, 4  ;;  %s54_s30 = sshll.u32 %s340_s29, 4  ;;  %s43_s28 = int_to_ptr.vmem [resolvable:$true] %s42_s28  ;;  %s55_s30 = int_to_ptr.vmem [resolvable:$true] %s54_s30 }
  0x1a   :  { %s275_s1 = scalar_lea.vmem %s43_s28, 2048  ;;  %p280_p11 = scmp.lt.s32.totalorder %s43_s28, %s43_s28 }
  0x1b   :  { %p276_p10 = scmp.ne.s32.totalorder %s43_s28, %s275_s1  ;;  %p281_p12 = scmp.lt.s32.totalorder %s275_s1, %s275_s1 }
  0x1d   :  { %p282_p13 = por %p281_p12, %p280_p11 }
  0x1f   :  { %p283_p0 = pnand %p282_p13, %p276_p10 }
  0x21   :  { %286 = shalt.err (!%p283_p0)
}
  0x22   :  { %48 = dma.hbm_to_vmem [thread:$0]  %s399_s2, 2048, %s43_s28, [#allocation6], %s337_s20, %s337_s20, %s338_s21  }
  0x23   :  { %s295_s0 = scalar_lea.vmem %s55_s30, 2048  ;;  %p300_p2 = scmp.lt.s32.totalorder %s55_s30, %s55_s30 }
  0x24   :  { %p296_p1 = scmp.ne.s32.totalorder %s55_s30, %s295_s0  ;;  %p301_p3 = scmp.lt.s32.totalorder %s295_s0, %s295_s0 }
  0x26   :  { %p302_p4 = por %p301_p3, %p300_p2 }
  0x28   :  { %p303_p5 = pnand %p302_p4, %p296_p1 }
  0x2a   :  { %306 = shalt.err (!%p303_p5)
}
  0x2b   :  { %60 = dma.hbm_to_vmem [thread:$0]  %s400_s3, 2048, %s55_s30, [#allocation9], %s337_s20, %s337_s20, %s338_s21  }
  0x2c   :  { %327 = dma.done.wait [#allocation3], 2048  }
  0x2d   :  { %328 = vsyncadd [#allocation3], 4294965248 }
  0x2e   :  { %329 = dma.done.wait [#allocation6], 4096  }
  0x2f   :  { %330 = vsyncadd [#allocation6], 4294963200 }
  0x30   :  { %331 = dma.done.wait [#allocation9], 2048  }
  0x31   :  { %332 = vsyncadd [#allocation9], 4294965248  ;;  %v73_v0 = vld [vmem:[#allocation2] sm:$0xff]  ;;  %v74_v4 = vld [vmem:[#allocation2 + $0x8] sm:$0xff]  ;;  %s341_s2 = smov [#allocation10]  }
  0x32   :  { %v89_v1 = vld [vmem:[#allocation5] sm:$0xff]  ;;  %v90_v5 = vld [vmem:[#allocation5 + $0x8] sm:$0xff]  ;;  %v75_v9 = vld [vmem:[#allocation2 + $0x10] sm:$0xff]  ;;  %s206_s3 = sshll.u32 %s341_s2, 4  ;;  %s207_s3 = int_to_ptr.vmem [resolvable:$true] %s206_s3 }
  0x33   :  { %v121_v2 = vld [vmem:[#allocation7] sm:$0xff]  ;;  %v105_v3 = vadd.f32 %v89_v1, %v73_v0  ;;  %v106_v7 = vadd.f32 %v90_v5, %v74_v4  ;;  %v122_v8 = vld [vmem:[#allocation7 + $0x8] sm:$0xff]  ;;  %v91_v12 = vld [vmem:[#allocation5 + $0x10] sm:$0xff]  ;;  %s307_s9 = scalar_lea.vmem %s207_s3, 2048  ;;  %p312_p7 = scmp.lt.s32.totalorder %s207_s3, %s207_s3 }
  0x34   :  { %v153_v6 = vld [vmem:[#allocation8] sm:$0xff]  ;;  %v154_v11 = vld [vmem:[#allocation8 + $0x8] sm:$0xff]  ;;  %v123_v13 = vld [vmem:[#allocation7 + $0x10] sm:$0xff]  ;;  %v107_v15 = vadd.f32 %v91_v12, %v75_v9  ;;  %p308_p6 = scmp.ne.s32.totalorder %s207_s3, %s307_s9  ;;  %p313_p8 = scmp.lt.s32.totalorder %s307_s9, %s307_s9 }
  0x35   :  { %v137_v10 = vadd.f32 %v121_v2, %v105_v3  ;;  %v138_v14 = vadd.f32 %v122_v8, %v106_v7  ;;  %v76_v16 = vld [vmem:[#allocation2 + $0x18] sm:$0xff]  ;;  %v155_v20 = vld [vmem:[#allocation8 + $0x10] sm:$0xff]  ;;  %v77_v22 = vld [vmem:[#allocation2 + $0x20] sm:$0xff] }
  0x36   :  { %v92_v17 = vld [vmem:[#allocation5 + $0x18] sm:$0xff]  ;;  %v93_v23 = vld [vmem:[#allocation5 + $0x20] sm:$0xff]  ;;  %v139_v25 = vadd.f32 %v123_v13, %v107_v15  ;;  %v78_v29 = vld [vmem:[#allocation2 + $0x28] sm:$0xff]  ;;  %p314_p9 = por %p313_p8, %p312_p7 }
  0x37   :  { %v124_v18 = vld [vmem:[#allocation7 + $0x18] sm:$0xff]  ;;  %v169_v19 = vadd.f32 %v153_v6, %v137_v10  ;;  %v108_v21 = vadd.f32 %v92_v17, %v76_v16  ;;  %v170_v24 = vadd.f32 %v154_v11, %v138_v14  ;;  %v109_v27 = vadd.f32 %v93_v23, %v77_v22  ;;  %v125_v28 = vld [vmem:[#allocation7 + $0x20] sm:$0xff]  ;;  %v94_v32 = vld [vmem:[#allocation5 + $0x28] sm:$0xff] }
  0x38   :  { %v156_v26 = vld [vmem:[#allocation8 + $0x18] sm:$0xff]  ;;  %v157_v31 = vld [vmem:[#allocation8 + $0x20] sm:$0xff]  ;;  %v126_v33 = vld [vmem:[#allocation7 + $0x28] sm:$0xff]  ;;  %v171_v34 = vadd.f32 %v155_v20, %v139_v25  ;;  %v110_v36 = vadd.f32 %v94_v32, %v78_v29  ;;  %p315_p10 = pnand %p314_p9, %p308_p6 }
  0x39   :  { %185 = vst [vmem:[#allocation10] sm:$0xff] %v169_v19  ;;  %v140_v30 = vadd.f32 %v124_v18, %v108_v21  ;;  %186 = vst [vmem:[#allocation10 + $0x8] sm:$0xff] %v170_v24  ;;  %v141_v35 = vadd.f32 %v125_v28, %v109_v27  ;;  %v79_v37 = vld [vmem:[#allocation2 + $0x30] sm:$0xff]  ;;  %v158_v41 = vld [vmem:[#allocation8 + $0x28] sm:$0xff] }
  0x3a   :  { %v95_v38 = vld [vmem:[#allocation5 + $0x30] sm:$0xff]  ;;  %v80_v43 = vld [vmem:[#allocation2 + $0x38] sm:$0xff]  ;;  %187 = vst [vmem:[#allocation10 + $0x10] sm:$0xff] %v171_v34  ;;  %v142_v46 = vadd.f32 %v126_v33, %v110_v36  ;;  %v81_v50 = vld [vmem:[#allocation2 + $0x40] sm:$0xff] }
  0x3b   :  { %v127_v39 = vld [vmem:[#allocation7 + $0x30] sm:$0xff]  ;;  %v172_v40 = vadd.f32 %v156_v26, %v140_v30  ;;  %v111_v42 = vadd.f32 %v95_v38, %v79_v37  ;;  %v96_v44 = vld [vmem:[#allocation5 + $0x38] sm:$0xff]  ;;  %v173_v45 = vadd.f32 %v157_v31, %v141_v35  ;;  %v97_v53 = vld [vmem:[#allocation5 + $0x40] sm:$0xff] }
  0x3c   :  { %v159_v47 = vld [vmem:[#allocation8 + $0x30] sm:$0xff]  ;;  %v112_v48 = vadd.f32 %v96_v44, %v80_v43  ;;  %v128_v49 = vld [vmem:[#allocation7 + $0x38] sm:$0xff]  ;;  %v129_v54 = vld [vmem:[#allocation7 + $0x40] sm:$0xff]  ;;  %v174_v55 = vadd.f32 %v158_v41, %v142_v46  ;;  %v113_v57 = vadd.f32 %v97_v53, %v81_v50 }
  0x3d   :  { %188 = vst [vmem:[#allocation10 + $0x18] sm:$0xff] %v172_v40  ;;  %v143_v51 = vadd.f32 %v127_v39, %v111_v42  ;;  %v160_v52 = vld [vmem:[#allocation8 + $0x38] sm:$0xff]  ;;  %189 = vst [vmem:[#allocation10 + $0x20] sm:$0xff] %v173_v45  ;;  %v82_v58 = vld [vmem:[#allocation2 + $0x48] sm:$0xff] }
  0x3e   :  { %v144_v56 = vadd.f32 %v128_v49, %v112_v48  ;;  %v98_v59 = vld [vmem:[#allocation5 + $0x48] sm:$0xff]  ;;  %v161_v62 = vld [vmem:[#allocation8 + $0x40] sm:$0xff]  ;;  %v83_v0 = vld [vmem:[#allocation2 + $0x50] sm:$0xff]  ;;  %190 = vst [vmem:[#allocation10 + $0x28] sm:$0xff] %v174_v55  ;;  %v145_v3 = vadd.f32 %v129_v54, %v113_v57 }
  0x3f   :  { %v130_v60 = vld [vmem:[#allocation7 + $0x48] sm:$0xff]  ;;  %v175_v61 = vadd.f32 %v159_v47, %v143_v51  ;;  %v114_v63 = vadd.f32 %v98_v59, %v82_v58  ;;  %v99_v1 = vld [vmem:[#allocation5 + $0x50] sm:$0xff]  ;;  %v84_v7 = vld [vmem:[#allocation2 + $0x58] sm:$0xff] }
  0x40   :  { %v176_v2 = vadd.f32 %v160_v52, %v144_v56  ;;  %v162_v4 = vld [vmem:[#allocation8 + $0x48] sm:$0xff]  ;;  %v115_v5 = vadd.f32 %v99_v1, %v83_v0  ;;  %v131_v6 = vld [vmem:[#allocation7 + $0x50] sm:$0xff]  ;;  %v100_v10 = vld [vmem:[#allocation5 + $0x58] sm:$0xff]  ;;  %v177_v12 = vadd.f32 %v161_v62, %v145_v3 }
  0x41   :  { %191 = vst [vmem:[#allocation10 + $0x30] sm:$0xff] %v175_v61  ;;  %v146_v8 = vadd.f32 %v130_v60, %v114_v63  ;;  %v163_v9 = vld [vmem:[#allocation8 + $0x50] sm:$0xff]  ;;  %v132_v11 = vld [vmem:[#allocation7 + $0x58] sm:$0xff]  ;;  %v116_v14 = vadd.f32 %v100_v10, %v84_v7  ;;  %v85_v15 = vld [vmem:[#allocation2 + $0x60] sm:$0xff] }
  0x42   :  { %192 = vst [vmem:[#allocation10 + $0x38] sm:$0xff] %v176_v2  ;;  %v147_v13 = vadd.f32 %v131_v6, %v115_v5  ;;  %v101_v16 = vld [vmem:[#allocation5 + $0x60] sm:$0xff]  ;;  %v164_v19 = vld [vmem:[#allocation8 + $0x58] sm:$0xff]  ;;  %v86_v21 = vld [vmem:[#allocation2 + $0x68] sm:$0xff] }
  0x43   :  { %v133_v17 = vld [vmem:[#allocation7 + $0x60] sm:$0xff]  ;;  %v178_v18 = vadd.f32 %v162_v4, %v146_v8  ;;  %v117_v20 = vadd.f32 %v101_v16, %v85_v15  ;;  %v102_v22 = vld [vmem:[#allocation5 + $0x68] sm:$0xff]  ;;  %193 = vst [vmem:[#allocation10 + $0x40] sm:$0xff] %v177_v12  ;;  %v148_v24 = vadd.f32 %v132_v11, %v116_v14  ;;  %v87_v28 = vld [vmem:[#allocation2 + $0x70] sm:$0xff] }
  0x44   :  { %v179_v23 = vadd.f32 %v163_v9, %v147_v13  ;;  %v165_v25 = vld [vmem:[#allocation8 + $0x60] sm:$0xff]  ;;  %v118_v26 = vadd.f32 %v102_v22, %v86_v21  ;;  %v134_v27 = vld [vmem:[#allocation7 + $0x68] sm:$0xff]  ;;  %v103_v31 = vld [vmem:[#allocation5 + $0x70] sm:$0xff] }
  0x45   :  { %194 = vst [vmem:[#allocation10 + $0x48] sm:$0xff] %v178_v18  ;;  %v149_v29 = vadd.f32 %v133_v17, %v117_v20  ;;  %v166_v30 = vld [vmem:[#allocation8 + $0x68] sm:$0xff]  ;;  %v135_v32 = vld [vmem:[#allocation7 + $0x70] sm:$0xff]  ;;  %v180_v33 = vadd.f32 %v164_v19, %v148_v24  ;;  %v119_v35 = vadd.f32 %v103_v31, %v87_v28  ;;  %v88_v36 = vld [vmem:[#allocation2 + $0x78] sm:$0xff] }
  0x46   :  { %195 = vst [vmem:[#allocation10 + $0x50] sm:$0xff] %v179_v23  ;;  %v150_v34 = vadd.f32 %v134_v27, %v118_v26  ;;  %v104_v37 = vld [vmem:[#allocation5 + $0x78] sm:$0xff]  ;;  %v167_v40 = vld [vmem:[#allocation8 + $0x70] sm:$0xff] }
  0x47   :  { %v136_v38 = vld [vmem:[#allocation7 + $0x78] sm:$0xff]  ;;  %v181_v39 = vadd.f32 %v165_v25, %v149_v29  ;;  %v120_v41 = vadd.f32 %v104_v37, %v88_v36  ;;  %196 = vst [vmem:[#allocation10 + $0x58] sm:$0xff] %v180_v33  ;;  %v151_v43 = vadd.f32 %v135_v32, %v119_v35 }
  0x48   :  { %v182_v42 = vadd.f32 %v166_v30, %v150_v34  ;;  %v168_v44 = vld [vmem:[#allocation8 + $0x78] sm:$0xff] }
  0x49   :  { %197 = vst [vmem:[#allocation10 + $0x60] sm:$0xff] %v181_v39  ;;  %v152_v45 = vadd.f32 %v136_v38, %v120_v41  ;;  %v183_v46 = vadd.f32 %v167_v40, %v151_v43 }
  0x4a   :  { %198 = vst [vmem:[#allocation10 + $0x68] sm:$0xff] %v182_v42 }
  0x4b   :  { %v184_v47 = vadd.f32 %v168_v44, %v152_v45  ;;  %199 = vst [vmem:[#allocation10 + $0x70] sm:$0xff] %v183_v46 }
  0x4d   :  { %200 = vst [vmem:[#allocation10 + $0x78] sm:$0xff] %v184_v47 }
  0x4e   :  { %318 = shalt.err (!%p315_p10)
}
  0x4f   :  { %212 = dma.vmem_to_hbm [thread:$0]  %s207_s3, 2048, %s401_s4, [#allocation4], %s337_s20, %s337_s20, %s338_s21  }
  0x50   :  { %333 = dma.done.wait [#allocation4], 2048  }
  0x51   :  { %334 = vsyncadd [#allocation4], 4294965248 }
  0x52   :  { %216 = vsyncpa [#allocation3], 1 }
  0x53   :  { %217 = vsyncpa [#allocation6], 1 }
  0x54   :  { %218 = vsyncpa [#allocation9], 1 }
  0x55   :  { %219 = vsyncpa [#allocation4], 1 }

</bundles_post_ra>
